<compile_context>
chip_gen: v5e
topology: v5e:2x2
jax: 0.10.0
libtpu: 0.0.40
codegen_flags: <defaults>
</compile_context>

<pallas_src>
import functools

import jax
import jax.numpy as jnp
from jax.experimental import pallas as pl
from jax.experimental.pallas import tpu as pltpu


def _cdiv(a: int, b: int) -> int:
    return -(-a // b)


def _gating_linear_kernel(h_ref, w_ref, b_ref, o_ref):
    """One lane-dense output tile of scores = h_last @ W + b.

    h_ref: (1, hidden)       last-token hidden state, resident across the grid
    w_ref: (hidden, tile_n)  column tile of the linear weight (HBM-bound stream)
    b_ref: (1, tile_n)       f32 bias tile
    o_ref: (1, tile_n)       f32 scores tile
    """
    h = h_ref[...].astype(jnp.bfloat16)      # MXU-native operands,
    w = w_ref[...].astype(jnp.bfloat16)      # f32 accumulate below.
    o_ref[...] = jnp.dot(h, w, preferred_element_type=jnp.float32) + b_ref[...]


@functools.partial(jax.jit, static_argnames=("max_tile_n", "max_weight_tile_bytes"))
def gating_forward(
    hidden_states,                                   # (seq, hidden)
    weight,                                          # (hidden, num_uids)
    bias,                                            # (num_uids,)
    *,
    max_tile_n: int = 8192,
    max_weight_tile_bytes: int = 8 * 1024 * 1024,    # per-buffer weight tile cap
):
    """scores[j] = hidden_states[-1, :] @ weight[:, j] + bias[j] -> (num_uids,) f32."""
    seq, hidden = hidden_states.shape
    h_w, num_uids = weight.shape
    assert h_w == hidden
    assert bias.shape == (num_uids,)

    # Only the last token row is used; fused under this jit, never a separate pass.
    h_last = hidden_states[seq - 1 : seq, :]                              # (1, H)
    b2 = bias.astype(jnp.float32).reshape(1, num_uids)                    # (1, N)

    # ---- tile selection (Python ints; shapes are static under jit) ----------
    lane = 128
    w_itemsize = jnp.dtype(weight.dtype).itemsize
    n_lane_padded = _cdiv(num_uids, lane) * lane

    # Widest column tile whose single buffer stays under max_weight_tile_bytes.
    cap_cols = max(lane, (max_weight_tile_bytes // (hidden * w_itemsize)) // lane * lane)
    tile_n = min(n_lane_padded, max_tile_n, cap_cols)
    # Give both v7x TensorCores work whenever at least two lane blocks exist.
    if n_lane_padded >= 2 * lane:
        tile_n = min(tile_n, _cdiv(n_lane_padded // lane, 2) * lane)
    grid_n = _cdiv(n_lane_padded, tile_n)
    n_padded = grid_n * tile_n                        # lane-dense output slab width

    # Weight-stream buffer depth: 3-deep only when there are enough tiles to pipeline.
    w_tile_bytes = hidden * tile_n * w_itemsize
    n_buf_w = 3 if grid_n >= 3 else 2

    # VMEM limit from the actual footprint (+ headroom); safe on v7x's 64 MiB.
    vmem_bytes = (
        n_buf_w * w_tile_bytes                        # weight buffers
        + 2 * tile_n * 4                              # bias double buffer
        + 2 * tile_n * 4                              # output double buffer
        + 2 * hidden * jnp.dtype(hidden_states.dtype).itemsize  # resident h row
        + (2 << 20)                                   # compiler scratch headroom
    )
    vmem_limit = int(min(max(vmem_bytes, 4 << 20), 100 << 20))

    w_spec_kwargs = {}
    if n_buf_w == 3:
        w_spec_kwargs["pipeline_mode"] = pl.Buffered(3)

    out = pl.pallas_call(
        _gating_linear_kernel,
        out_shape=jax.ShapeDtypeStruct((1, n_padded), jnp.float32),
        grid=(grid_n,),
        in_specs=[
            pl.BlockSpec((1, hidden), lambda j: (0, 0)),
            pl.BlockSpec((hidden, tile_n), lambda j: (0, j), **w_spec_kwargs),
            pl.BlockSpec((1, tile_n), lambda j: (0, j)),
        ],
        out_specs=pl.BlockSpec((1, tile_n), lambda j: (0, j)),
        compiler_params=pltpu.CompilerParams(
            dimension_semantics=("parallel",),
            vmem_limit_bytes=vmem_limit,
        ),
    )(h_last, weight, b2)

    return out[0, :num_uids]                          # (num_uids,) f32


def reference_forward(hidden_states, weight, bias):
    """Same math as the kernel (bf16 operands, f32 accumulate) in plain JAX."""
    h = hidden_states[-1, :].astype(jnp.bfloat16).astype(jnp.float32)
    w = weight.astype(jnp.bfloat16).astype(jnp.float32)
    return h @ w + bias.astype(jnp.float32)


if __name__ == "__main__":
    def make_inputs(key, seq, hidden, num_uids):
        k_h, k_w, k_b = jax.random.split(key, 3)
        # Synthetic encoder output (stand-in for transformer last_hidden_state).
        hidden_states = jax.random.normal(k_h, (seq, hidden), dtype=jnp.float32)
        # torch.nn.Linear init: weight, bias ~ U(-1/sqrt(in_features), 1/sqrt(in_features)).
        bound = 1.0 / (hidden ** 0.5)
        weight = jax.random.uniform(k_w, (hidden, num_uids), dtype=jnp.float32,
                                    minval=-bound, maxval=bound)
        bias = jax.random.uniform(k_b, (num_uids,), dtype=jnp.float32,
                                  minval=-bound, maxval=bound)
        return hidden_states, weight, bias

    root = jax.random.PRNGKey(0)
    key1, key2 = jax.random.split(root)

    # 1) Small shapes consistent with the module: seq=8 tokens, hidden=32,
    #    num_uids=250 (not a multiple of 128 -> exercises the ragged last weight
    #    tile and a 2-step "parallel" grid that feeds both v7x TensorCores).
    h1, w1, b1 = make_inputs(key1, 8, 32, 250)
    s1 = jax.block_until_ready(gating_forward(h1, w1, b1))
    r1 = reference_forward(h1, w1, b1)
    assert s1.shape == (250,) and s1.dtype == jnp.float32
    assert jnp.allclose(s1, r1, atol=1e-4, rtol=1e-4)

    # 2) Module-default num_uids=4096 with a forced-narrow tile to exercise the
    #    multi-tile path with the 3-deep buffered weight stream.
    h2, w2, b2 = make_inputs(key2, 8, 32, 4096)
    s2 = jax.block_until_ready(gating_forward(h2, w2, b2, max_tile_n=512))
    r2 = reference_forward(h2, w2, b2)
    assert s2.shape == (4096,) and s2.dtype == jnp.float32
    assert jnp.allclose(s2, r2, atol=1e-4, rtol=1e-4)

    print("KERNEL_OK")
</pallas_src>

<mosaic_0001>
module attributes {stable_mosaic.version = 11 : i64} {
  func.func @_gating_linear_kernel(%arg0: i32, %arg1: memref<1x32xf32, #tpu.memory_space<vmem>>, %arg2: memref<32x128xf32, #tpu.memory_space<vmem>>, %arg3: memref<1x128xf32, #tpu.memory_space<vmem>>, %arg4: memref<1x128xf32, #tpu.memory_space<vmem>>) attributes {dimension_semantics = [#tpu.dimension_semantics<parallel>], iteration_bounds = array<i64: 2>, scalar_prefetch = 0 : i64, scratch_operands = 0 : i64, tpu.core_type = #tpu.core_type<tc>, window_params = [{pipeline_mode = #tpu.pipeline_mode<synchronous>, transform_indices = @transform_0, window_bounds = array<i64: 1, 32>}, {transform_indices = @transform_1, window_bounds = array<i64: 32, 128>}, {transform_indices = @transform_2, window_bounds = array<i64: 1, 128>}, {transform_indices = @transform_3, window_bounds = array<i64: 1, 128>}]} {
    %c0 = arith.constant 0 : index
    %c0_0 = arith.constant 0 : index
    %0 = vector.load %arg1[%c0, %c0_0] : memref<1x32xf32, #tpu.memory_space<vmem>>, vector<1x32xf32>
    %1 = arith.truncf %0 : vector<1x32xf32> to vector<1x32xbf16>
    %c0_1 = arith.constant 0 : index
    %c0_2 = arith.constant 0 : index
    %2 = vector.load %arg2[%c0_1, %c0_2] : memref<32x128xf32, #tpu.memory_space<vmem>>, vector<32x128xf32>
    %3 = arith.truncf %2 : vector<32x128xf32> to vector<32x128xbf16>
    %cst = arith.constant dense<0.000000e+00> : vector<1x128xf32>
    %4 = tpu.matmul %1, %3, %cst {dimension_numbers = #tpu.dot_dimension_numbers<[1], [0], [0], [1], [0, 0, 1, 1], [], []>} : vector<1x32xbf16>, vector<32x128xbf16>, vector<1x128xf32> -> vector<1x128xf32>
    %c0_3 = arith.constant 0 : index
    %c0_4 = arith.constant 0 : index
    %5 = vector.load %arg3[%c0_3, %c0_4] : memref<1x128xf32, #tpu.memory_space<vmem>>, vector<1x128xf32>
    %6 = arith.addf %4, %5 : vector<1x128xf32>
    %c0_5 = arith.constant 0 : index
    %c0_6 = arith.constant 0 : index
    %7 = vector.load %arg4[%c0_5, %c0_6] : memref<1x128xf32, #tpu.memory_space<vmem>>, vector<1x128xf32>
    tpu.vector_store %arg4[%c0_5, %c0_6], %6 {strides = array<i32>} : memref<1x128xf32, #tpu.memory_space<vmem>>, vector<1x128xf32>,
    return
  }
  func.func @transform_0(%arg0: i32) -> (i32, i32) {
    %c0_i32 = arith.constant 0 : i32
    %c0_i32_0 = arith.constant 0 : i32
    %c0_i32_1 = arith.constant 0 : i32
    return %c0_i32, %c0_i32_0 : i32, i32
  }
  func.func @transform_1(%arg0: i32) -> (i32, i32) {
    %c0_i32 = arith.constant 0 : i32
    %c0_i32_0 = arith.constant 0 : i32
    return %c0_i32, %arg0 : i32, i32
  }
  func.func @transform_2(%arg0: i32) -> (i32, i32) {
    %c0_i32 = arith.constant 0 : i32
    %c0_i32_0 = arith.constant 0 : i32
    return %c0_i32, %arg0 : i32, i32
  }
  func.func @transform_3(%arg0: i32) -> (i32, i32) {
    %c0_i32 = arith.constant 0 : i32
    %c0_i32_0 = arith.constant 0 : i32
    return %c0_i32, %arg0 : i32, i32
  }
}

</mosaic_0001>

<bundles_post_ra>
// kernel: gating_forward.1
= control target key start
LH: loop header
LB: loop body
LE: loop exit
PB: predicated region body
PF: predicated region fallthrough
CT: control target
= control target key end

     0   :  { %8 = vsyncpa [#allocation3], 0  ;;  %s633_s0 = inlined_call_operand.vmem [shape: f32[1,32], index: 0, kind: input, shape index: {}]   ;;  %s634_s1 = inlined_call_operand.hbm [shape: f32[32,250], index: 1, kind: input, shape index: {}]   ;;  %s635_s2 = inlined_call_operand.vmem [shape: f32[1,250], index: 2, kind: input, shape index: {}]   ;;  %s636_s3 = inlined_call_operand.hbm [shape: f32[1,256], index: 3, kind: output, shape index: {}]  }
   0x1   :  { %10 = vsyncpa [#allocation3 + $0x1], 0 }
   0x2   :  { %11 = vsyncpa [#allocation4], 0 }
   0x3   :  { %13 = vsyncpa [#allocation4 + $0x1], 0  ;;  %s499_s12 = smov 0   ;;  %s501_s13 = smov 0  }
   0x4   :  { %s503_s14 = smov 0   ;;  %s505_s15 = smov 0  }
   0x5 LB: > { %s520_s16 = sadd.s32 4294967295, %s474_s15   ;;  %s319_s17 = sadd.s32 4294967294, %s474_s15   ;;  %s474_s15 = sphi %s505_s15, %s645_s15   ;;  %s470_s14 = sphi %s503_s14, %s644_s14   ;;  %s466_s13 = sphi %s501_s13, %s643_s13   ;;  %s462_s12 = sphi %s499_s12, %s642_s12  }
   0x6   : > { %s524_s18 = sadd.s32 1, %s474_s15   ;;  %s47_s19 = sadd.s32 1, %s470_s14 }
   0x7   : > { %s44_s20 = ssub.s32 %s474_s15, %s524_s18  ;;  %p54_p0 = scmp.ne.s32.totalorder %s470_s14, %s466_s13 }
   0x8   : > { %p45_p1 = scmp.eq.s32.totalorder %s44_s20, 0  ;;  %p55_p2 = scmp.eq.s32.totalorder %s474_s15, 0 }
   0x9   : > { %p60_p3 = scmp.ne.s32.totalorder %s466_s13, %s462_s12  ;;  %p61_p4 = scmp.eq.s32.totalorder %s520_s16, 0 }
   0xa   : > { %s536_s21 = scalar_select %p45_p1, %s470_s14, %s47_s19  }
   0xb   : > { %p538_p5 = por %p55_p2, %p54_p0  ;;  %p542_p6 = por %p61_p4, %p60_p3 }
   0xc   : > { %p110_p7 = scmp.eq.s32.totalorder %s520_s16, 1  ;;  %p116_p8 = scmp.eq.s32.totalorder %s319_s17, 1 }
   0xd   : > { %p321_p9 = scmp.ge.s32.totalorder %s474_s15, 2  ;;  %p341_p10 = scmp.lt.s32.totalorder %s474_s15, 2 }
   0xe   : > { %p549_p11 = por %p110_p7, %p54_p0  ;;  %p553_p12 = por %p116_p8, %p60_p3 }
   0xf   : > { %s139_s26 = sand.u32 1, %s470_s14   ;;  %s323_s27 = sshll.u32 %s474_s15, 3 }
  0x10   : > { %s322_s28 = sshll.u32 %s139_s26, 5  ;;  %s147_s4 = scalar_lea.hbm %s634_s1, %s323_s27 }
  0x11   : > { %s148_s5 = sshll.u32 %s147_s4, 4  ;;  %s143_s6 = scalar_lea.vmem [#allocation2], %s322_s28  ;;  %s149_s5 = int_to_ptr.hbm [resolvable:$true] %s148_s5 }
  0x12   : > { %s150_s7 = sshll.u32 %s143_s6, 4  ;;  %p564_p13 = pnand %p341_p10, %p538_p5  ;;  %s151_s7 = int_to_ptr.vmem [resolvable:$true] %s150_s7 }
  0x13   : > { %p324_p0 = scmp.ge.s32.totalorder %s474_s15, 1  ;;  %s140_s9 = scalar_lea.sflag [#allocation3], %s139_s26 }
  0x14   : > { %s378_s10 = sshra.s32 %s149_s5, 4  ;;  %p382_p2 = pneg %p564_p13  ;;  %s379_s10 = int_to_ptr.hbm [resolvable:$true] %s378_s10 }
  0x15   : > { %s380_s11 = scalar_lea.hbm %s379_s10, 32  ;;  %s385_s20 = scalar_lea.hbm %s634_s1, 64 }
  0x16   : > { %p381_p1 = scmp.ne.s32.totalorder %s379_s10, %s380_s11  ;;  %p386_p5 = scmp.lt.s32.totalorder %s379_s10, %s634_s1 }
  0x17   : > { %p387_p7 = scmp.lt.s32.totalorder %s385_s20, %s380_s11 }
  0x18   : > { %p383_p3 = pnand %p382_p2, %p381_p1 }
  0x19   : > { %p388_p8 = por %p387_p7, %p386_p5 }
  0x1a   : > { %p384_p4 = pneg %p383_p3 }
  0x1c   : > { %p389_p10 = pnand %p388_p8, %p384_p4 }
  0x1e   : > { %392 = shalt.err (!%p389_p10)
}
  0x1f   : > { %s476_s26 = smov 256   ;;  %s477_s28 = smov 128  }
  0x20   : > { %s478_s29 = smov 8   ;;  %p164_p1 = scmp.lt.s32.totalorder %s474_s15, 3 }
  0x21   : > { %336 = dma.hbm_to_vmem [thread:$0]  (!%p564_p13), %s149_s5, 512, %s151_s7, %s140_s9, %s476_s26, %s477_s28, %s478_s29  }
  0x22   : > { %p165_p2 = pnand %p324_p0, %p164_p1 }
  0x23   : > { %s583_s30 = sand.u32 (!%p165_p2), 1, %s466_s13  }
  0x24   : > { %168 = sbr.rel (%p165_p2) target bundleno = 186 (0xba), region = 32  ;;  %s325_s4 = sshll.u32 (!%p165_p2), %s583_s30, 5 }
  0x25   : > { %s171_s6 = scalar_lea.sflag (!%p165_p2), [#allocation3], %s583_s30  ;;  %s174_s10 = scalar_lea.vmem (!%p165_p2), [#allocation2], %s325_s4 }
  0x29   : > { %453 = dma.done.wait (%p542_p6), %s171_s6, 512  }
  0x2a   : > { %455 = vsyncadd (%p542_p6), %s171_s6, 4294966784  ;;  %v208_v0 = vld [vmem:[%s174_s10 + $0x10] sm:$0xff]  ;;  %v209_v1 = vld [vmem:[%s174_s10 + $0x18] sm:$0xff]  ;;  %vm213_vm0 = vcmask 261120   ;;  %p200_p6 = scmp.lt.s32.totalorder %s520_s16, 1  ;;  %s240_s20 = scalar_lea.hbm %s636_s3, %s520_s16 }
  0x2b   : > { %v206_v2 = vld [vmem:[%s174_s10] sm:$0xff]  ;;  %v211_v3 = vpack.c.bf16 %v209_v1, %v208_v0  ;;  %v207_v4 = vld [vmem:[%s174_s10 + $0x8] sm:$0xff]  ;;  %s199_s22 = scalar_lea.vmem [#allocation5], %s583_s30  ;;  %s244_s26 = sshll.u32 %s240_s20, 4  ;;  %s245_s26 = int_to_ptr.hbm [resolvable:$true] %s244_s26 }
  0x2c   : > { %v210_v5 = vpack.c.bf16 %v207_v4, %v206_v2  ;;  %v204_v6 = vld [vmem:[%s633_s0] sm:$0x1]  ;;  %s201_s23 = scalar_select %p200_p6, %s520_s16, 1 }
  0x2d   : > { %223 = vmatpush.bf16.msra.mxu0 %v211_v3  ;;  %v205_v7 = vpack.c.bf16 %v204_v6, %v204_v6  ;;  %s242_s27 = sshll.u32 %s199_s22, 4  ;;  %s232_s28 = scalar_lea.sflag [#allocation4], %s583_s30  ;;  %s243_s27 = int_to_ptr.vmem [resolvable:$true] %s242_s27 }
  0x2e   : > { %s202_s11 = scalar_lea.vmem %s635_s2, %s201_s23  ;;  %s422_s29 = sshra.s32 %s245_s26, 4  ;;  %s423_s29 = int_to_ptr.hbm [resolvable:$true] %s422_s29 }
  0x2f   : > { %v212_v8 = vld [vmem:[%s202_s11] sm:$0x1]  ;;  %s424_s4 = scalar_lea.hbm %s423_s29, 1  ;;  %s428_s16 = scalar_lea.hbm %s636_s3, 2 }
  0x30   : > { %p425_p13 = scmp.ne.s32.totalorder %s423_s29, %s424_s4  ;;  %p429_p4 = scmp.lt.s32.totalorder %s423_s29, %s636_s3 }
  0x31   : > { %224 = vmatpush.bf16.msra.mxu0 %v210_v5  ;;  %p430_p5 = scmp.lt.s32.totalorder %s428_s16, %s424_s4 }
  0x32   : > { %p426_p0 = pnand %p425_p13, %p549_p11 }
  0x33   : > { %p431_p7 = por %p430_p5, %p429_p4 }
  0x34   : > { %326 = vmatmul.msk.bf16.vlgmr.msra.gmra.mxu0 %vm213_vm0, %v205_v7  ;;  %p427_p3 = pneg %p426_p0 }
  0x36   : > { %p432_p8 = pnand %p431_p7, %p427_p3 }
  0xb1   : > { %v226_v9 = vpop.f32.mrf.mxu0 }
  0xb2   : > { %v227_v10 = vadd.f32 %v226_v9, %v212_v8 }
  0xb4   : > { %230 = vst [vmem:[%s199_s22] sm:$0x1] %v227_v10 }
  0xb5   : > { %435 = shalt.err (!%p432_p8)
}
  0xb6   : > { %331 = dma.vmem_to_hbm [thread:$0]  (%p549_p11), %s243_s27, 16, %s245_s26, %s232_s28  }
  0xb9   : > { %v228_v11 = vpop.f32.mrf.mxu0 }
  0xba PF: > { %s256_s30 = sand.u32 1, %s462_s12   ;;  %p338_p10 = pnand %p321_p9, %p553_p12 }
  0xbb   : > { %s257_s23 = scalar_lea.sflag [#allocation4], %s256_s30 }
  0xbc   : > { %p339_p1 = pneg %p338_p10 }
  0xbe   : > { %457 = dma.done.wait (%p339_p1), %s257_s23, 16  }
  0xbf   : > { %459 = vsyncadd (%p339_p1), %s257_s23, 4294967280  ;;  %p16_p2 = scmp.ge.s32.totalorder %s524_s18, 4   ;;  %s642_s12 = smov %s466_s13 }
  0xc0   : > { %s643_s13 = smov %s470_s14  ;;  %s644_s14 = smov %s536_s21 }
  0xc1   : > { %s645_s15 = smov %s524_s18  ;;  %18 = sbr.rel (!%p16_p2) target bundleno = 5 (0x5), region = 80 }
  0xc6   :  { %262 = vsyncpa [#allocation3], 1 }
  0xc7   :  { %264 = vsyncpa [#allocation3 + $0x1], 1 }
  0xc8   :  { %265 = vsyncpa [#allocation4], 1 }
  0xc9   :  { %267 = vsyncpa [#allocation4 + $0x1], 1 }

</bundles_post_ra>
